<compile_context>
chip_gen: v7x
topology: tpu7x:2x2x1
jax: 0.10.0
libtpu: 0.0.40
codegen_flags: <defaults>
</compile_context>

<pallas_src>
import jax
import jax.numpy as jnp
from jax.experimental import pallas as pl
from jax.experimental.pallas import tpu as pltpu

_LANE = 128
_SUBLANE = 8


def _round_up(x, m):
    return ((x + m - 1) // m) * m


def _silu_xla(x):
    return x * jax.nn.sigmoid(x)


def _silu_eup(x):
    # exp already runs on the EUP; the approximate reciprocal keeps the
    # divide on the EUP slot instead of the contended VALU slot.
    return x * pl.reciprocal(1.0 + jnp.exp(-x), approx=True)


# ---------------------------------------------------------------------------
# Kernel
# ---------------------------------------------------------------------------
def _embed_kernel(scal_ref,    # SMEM (6,)  [pat_off, pat_diag, wA, bA, wB, bB]
                  norm_w_ref,  # VMEM (1, D)
                  edge_w_ref,  # VMEM (1, E)
                  node0_ref,   # VMEM (1, 1, N)   node0 (varies over columns j)
                  node1_ref,   # VMEM (1, TR, 1)  node1 rows i of this tile
                  norm_ref,    # VMEM (1, TR, N, D)
                  edge_ref,    # VMEM (1, TR, N, E)
                  out_ref):    # VMEM (1, TR, N)
    TR = norm_ref.shape[1]
    N = norm_ref.shape[2]

    r = pl.program_id(1)
    row0 = pl.multiple_of(r * TR, TR)          # first global row of this tile

    # z_mixed[i, j] = node1[i] * node0[j]   (outer product, pure VPU)
    z = node1_ref[0] * node0_ref[0]                                    # (TR, N)

    # norm / edge channel squeezes: VPU multiply + XLU last-axis reduce
    # (no lane-sparse width-1 MXU matmuls, no reshape round-trips).
    norm_e = jnp.sum(norm_ref[0] * norm_w_ref[...], axis=-1)           # (TR, N)
    edge_e = jnp.sum(edge_ref[0] * edge_w_ref[...], axis=-1)           # (TR, N)

    # tuple pattern: embedding index 2 on the diagonal, 1 off-diagonal.
    ii = row0 + jax.lax.broadcasted_iota(jnp.int32, (TR, N), 0)
    jj = jax.lax.broadcasted_iota(jnp.int32, (TR, N), 1)
    pat = jnp.where(ii == jj, scal_ref[1], scal_ref[0])                # (TR, N)

    c = z * norm_e * pat * edge_e                                      # (TR, N)

    # mix_lin residual MLP (hidden_dim = 1 -> scalar weights).
    h = _silu_eup(c * scal_ref[2] + scal_ref[3])
    h = _silu_eup(h * scal_ref[4] + scal_ref[5])
    out_ref[0] = c + h


# ---------------------------------------------------------------------------
# Sizing helpers (lane-padding & generation aware)
# ---------------------------------------------------------------------------
def _tpu_vmem_capacity_bytes():
    try:
        return int(pltpu.get_tpu_info().vmem_capacity_bytes)
    except Exception:
        return 128 << 20                      # v5e/v6e default


def _stream_row_bytes(N, D, E):
    # One length-N row of the norm+edge streams as laid out in VMEM: the last
    # (channel) dim is lane-padded to 128.
    return N * (_round_up(D, _LANE) + _round_up(E, _LANE)) * 4


def _choose_row_tile(N, D, E, capacity, min_row_tiles=1):
    """Largest multiple-of-8 divisor of N whose padded, double-buffered stream
    tile fits ~38% of VMEM, honouring a minimum number of row tiles."""
    if N % _SUBLANE != 0:
        # TODO(synk): non-multiple-of-8 N falls back to a single full-plane
        # tile; pad N upstream for large problems.
        return N
    budget = int(0.38 * capacity)
    max_tr = max(_SUBLANE, budget // (2 * _stream_row_bytes(N, D, E)))
    tr = min(N, (max_tr // _SUBLANE) * _SUBLANE)
    tr = min(tr, max(_SUBLANE,
                     (N // max(min_row_tiles, 1) // _SUBLANE) * _SUBLANE))
    tr = max(tr, _SUBLANE)
    while N % tr != 0:
        tr -= _SUBLANE
    return tr


def _vmem_limit_bytes(N, D, E, TR, n_buf, capacity):
    pd = _round_up(D, _LANE)
    pe = _round_up(E, _LANE)
    stream = n_buf * TR * N * (pd + pe) * 4        # n-buffered norm+edge tiles
    out_tile = 2 * TR * _round_up(N, _LANE) * 4    # double-buffered output
    temps = TR * N * (pd + pe) * 4                 # reduce intermediates
    small = 1 << 18                                # weights, node0/node1, SMEM
    need = stream + out_tile + temps + small + (2 << 20)
    cap = (48 << 20) if capacity <= (64 << 20) else (100 << 20)
    return int(min(max(need, 8 << 20), cap))


def _stream_spec(block_shape, index_map, n_buf):
    if n_buf > 2:
        try:
            return pl.BlockSpec(block_shape, index_map,
                                pipeline_mode=pl.Buffered(n_buf))
        except Exception:
            pass
    return pl.BlockSpec(block_shape, index_map)


# ---------------------------------------------------------------------------
# Wrapper
# ---------------------------------------------------------------------------
def embed_distance_matrix_and_features(node_features, norm_embedding,
                                       edge_features, params):
    B, N, D = node_features.shape
    E = edge_features.shape[-1]

    capacity = _tpu_vmem_capacity_bytes()
    # v7x has 2 TensorCores sharing the parallel grid axes: make sure the
    # parallel extent is >= 2 even when B == 1.
    min_row_tiles = 2 if (B == 1 and N >= 2 * _SUBLANE) else 1
    TR = _choose_row_tile(N, D, E, capacity, min_row_tiles=min_row_tiles)
    n_row_tiles = N // TR

    # Deeper pipelining of the streams on v5e/v6e (128 MiB VMEM) when tiles
    # are small; keep double-buffering on v7x (64 MiB per TC).
    tile_stream_bytes = TR * _stream_row_bytes(N, D, E)
    n_buf = 3 if (capacity > (100 << 20) and tile_stream_bytes <= (2 << 20)
                  and n_row_tiles > 1) else 2

    # node0 / node1 (Dense(D->1) + activation) hoisted into plain XLA:
    # tiny inputs (B*N floats each), no recompute across grid steps.
    node0 = _silu_xla(node_features @ params["w0"] + params["b0"])      # (B, N)
    node1 = _silu_xla(node_features @ params["w1"] + params["b1"])      # (B, N)
    node0_in = node0[:, None, :]                                        # (B, 1, N)
    node1_in = node1[:, :, None]                                        # (B, N, 1)

    scalars = jnp.array(
        [params["pat_off"], params["pat_diag"],
         params["mix_w0"], params["mix_b0"],
         params["mix_w1"], params["mix_b1"]], dtype=jnp.float32)
    norm_w = params["w_norm"].reshape(1, D).astype(jnp.float32)
    edge_w = params["w_edge"].reshape(1, E).astype(jnp.float32)

    out = pl.pallas_call(
        _embed_kernel,
        out_shape=jax.ShapeDtypeStruct((B, N, N), jnp.float32),
        grid=(B, n_row_tiles),
        in_specs=[
            pl.BlockSpec(memory_space=pltpu.MemorySpace.SMEM),           # scalars
            pl.BlockSpec((1, D), lambda b, r: (0, 0)),                   # norm_w
            pl.BlockSpec((1, E), lambda b, r: (0, 0)),                   # edge_w
            pl.BlockSpec((1, 1, N), lambda b, r: (b, 0, 0)),             # node0
            pl.BlockSpec((1, TR, 1), lambda b, r: (b, r, 0)),            # node1 rows
            _stream_spec((1, TR, N, D), lambda b, r: (b, r, 0, 0), n_buf),  # norm
            _stream_spec((1, TR, N, E), lambda b, r: (b, r, 0, 0), n_buf),  # edge
        ],
        # TODO(synk): for best store bandwidth pad N to a multiple of 128
        # upstream so the (1, TR, N) output block is fully lane-dense.
        out_specs=pl.BlockSpec((1, TR, N), lambda b, r: (b, r, 0)),
        compiler_params=pltpu.CompilerParams(
            dimension_semantics=("parallel", "parallel"),
            vmem_limit_bytes=_vmem_limit_bytes(N, D, E, TR, n_buf, capacity)),
    )(scalars, norm_w, edge_w, node0_in, node1_in,
      norm_embedding, edge_features)

    return out[..., None]                                                # (B,N,N,1)


# ---------------------------------------------------------------------------
# Pure-JAX reference mirroring the PyTorch forward
# ---------------------------------------------------------------------------
def reference(node_features, norm_embedding, edge_features, params):
    node0 = _silu_xla(node_features @ params["w0"] + params["b0"])       # (B, N)
    node1 = _silu_xla(node_features @ params["w1"] + params["b1"])       # (B, N)
    z = node1[:, :, None] * node0[:, None, :]                            # (B, N, N)
    norm_e = jnp.einsum("bijd,d->bij", norm_embedding, params["w_norm"])
    edge_e = jnp.einsum("bije,e->bij", edge_features, params["w_edge"])
    N = node_features.shape[1]
    eye = jnp.eye(N, dtype=bool)[None]
    pat = jnp.where(eye, params["pat_diag"], params["pat_off"])
    c = z * norm_e * pat * edge_e
    h = _silu_xla(c * params["mix_w0"] + params["mix_b0"])
    h = _silu_xla(h * params["mix_w1"] + params["mix_b1"])
    return (c + h)[..., None]


def make_params(key, D, E):
    ks = jax.random.split(key, 10)
    return {
        "w0": jax.random.normal(ks[0], (D,), jnp.float32) * 0.1,
        "b0": jnp.float32(0.05),
        "w1": jax.random.normal(ks[1], (D,), jnp.float32) * 0.1,
        "b1": jnp.float32(-0.03),
        "w_norm": jax.random.normal(ks[2], (D,), jnp.float32) * 0.1,
        "w_edge": jax.random.normal(ks[3], (E,), jnp.float32) * 0.1,
        # nn.Embedding(3, 1, padding_idx=0): index 0 unused, 1 & 2 used
        "pat_off": jnp.float32(0.7),    # embedding of index 1 (off-diagonal)
        "pat_diag": jnp.float32(1.3),   # embedding of index 2 (diagonal)
        "mix_w0": jnp.float32(0.9),
        "mix_b0": jnp.float32(0.1),
        "mix_w1": jnp.float32(1.1),
        "mix_b1": jnp.float32(-0.2),
    }


if __name__ == "__main__":
    def run_case(B, N, D, E, key):
        k1, k2, k3, kp = jax.random.split(key, 4)
        node_features = jax.random.normal(k1, (B, N, D), jnp.float32)
        norm_embedding = jax.random.normal(k2, (B, N, N, D), jnp.float32)
        edge_features = jax.random.normal(k3, (B, N, N, E), jnp.float32)
        params = make_params(kp, D, E)

        out = embed_distance_matrix_and_features(
            node_features, norm_embedding, edge_features, params)
        out = jax.block_until_ready(out)

        ref = reference(node_features, norm_embedding, edge_features, params)
        assert out.shape == (B, N, N, 1), out.shape
        err = float(jnp.max(jnp.abs(out - ref)))
        # approx-EUP reciprocal in the residual SiLUs -> slightly relaxed tol
        assert jnp.allclose(out, ref, rtol=5e-3, atol=5e-3), err

    key = jax.random.PRNGKey(0)
    k_a, k_b = jax.random.split(key)
    run_case(2, 16, 32, 16, k_a)   # batched path, single row tile
    run_case(1, 16, 32, 16, k_b)   # B==1 path: forces >=2 row tiles (megacore)
    print("KERNEL_OK")
</pallas_src>

<mosaic_0001>
module attributes {stable_mosaic.version = 11 : i64} {
  func.func @_embed_kernel(%arg0: i32, %arg1: i32, %arg2: memref<6xf32, #tpu.memory_space<smem>>, %arg3: memref<1x32xf32, #tpu.memory_space<vmem>>, %arg4: memref<1x16xf32, #tpu.memory_space<vmem>>, %arg5: memref<1x1x16xf32, #tpu.memory_space<vmem>>, %arg6: memref<1x16x1xf32, #tpu.memory_space<vmem>>, %arg7: memref<1x16x16x32xf32, #tpu.memory_space<vmem>>, %arg8: memref<1x16x16x16xf32, #tpu.memory_space<vmem>>, %arg9: memref<1x16x16xf32, #tpu.memory_space<vmem>>) attributes {dimension_semantics = [#tpu.dimension_semantics<parallel>, #tpu.dimension_semantics<parallel>], iteration_bounds = array<i64: 2, 1>, scalar_prefetch = 0 : i64, scratch_operands = 0 : i64, tpu.core_type = #tpu.core_type<tc>, window_params = [{transform_indices = @transform_0, window_bounds = array<i64: 6>}, {pipeline_mode = #tpu.pipeline_mode<synchronous>, transform_indices = @transform_1, window_bounds = array<i64: 1, 32>}, {pipeline_mode = #tpu.pipeline_mode<synchronous>, transform_indices = @transform_2, window_bounds = array<i64: 1, 16>}, {transform_indices = @transform_3, window_bounds = array<i64: 1, 1, 16>}, {transform_indices = @transform_4, window_bounds = array<i64: 1, 16, 1>}, {transform_indices = @transform_5, window_bounds = array<i64: 1, 16, 16, 32>}, {transform_indices = @transform_6, window_bounds = array<i64: 1, 16, 16, 16>}, {transform_indices = @transform_7, window_bounds = array<i64: 1, 16, 16>}]} {
    %c16_i32 = arith.constant 16 : i32
    %0 = arith.muli %arg1, %c16_i32 : i32
    %1 = tpu.assume_multiple %0, 16 : i32
    %c0 = arith.constant 0 : index
    %c0_0 = arith.constant 0 : index
    %c0_1 = arith.constant 0 : index
    %2 = vector.load %arg6[%c0, %c0_0, %c0_1] : memref<1x16x1xf32, #tpu.memory_space<vmem>>, vector<1x16x1xf32>
    %3 = vector.shape_cast %2 : vector<1x16x1xf32> to vector<16x1xf32>
    %c0_2 = arith.constant 0 : index
    %c0_3 = arith.constant 0 : index
    %c0_4 = arith.constant 0 : index
    %4 = vector.load %arg5[%c0_2, %c0_3, %c0_4] : memref<1x1x16xf32, #tpu.memory_space<vmem>>, vector<1x1x16xf32>
    %5 = vector.shape_cast %4 : vector<1x1x16xf32> to vector<1x16xf32>
    %6 = vector.broadcast %3 : vector<16x1xf32> to vector<16x16xf32>
    %7 = vector.broadcast %5 : vector<1x16xf32> to vector<16x16xf32>
    %8 = arith.mulf %6, %7 : vector<16x16xf32>
    %c0_5 = arith.constant 0 : index
    %c0_6 = arith.constant 0 : index
    %c0_7 = arith.constant 0 : index
    %c0_8 = arith.constant 0 : index
    %9 = vector.load %arg7[%c0_5, %c0_6, %c0_7, %c0_8] : memref<1x16x16x32xf32, #tpu.memory_space<vmem>>, vector<1x16x16x32xf32>
    %10 = vector.shape_cast %9 : vector<1x16x16x32xf32> to vector<16x16x32xf32>
    %c0_9 = arith.constant 0 : index
    %c0_10 = arith.constant 0 : index
    %11 = vector.load %arg3[%c0_9, %c0_10] : memref<1x32xf32, #tpu.memory_space<vmem>>, vector<1x32xf32>
    %12 = vector.shape_cast %11 : vector<1x32xf32> to vector<1x1x32xf32>
    %13 = vector.broadcast %12 : vector<1x1x32xf32> to vector<16x16x32xf32>
    %14 = arith.mulf %10, %13 : vector<16x16x32xf32>
    %cst = arith.constant dense<0.000000e+00> : vector<16x16xf32>
    %15 = vector.multi_reduction <add>, %14, %cst [2] : vector<16x16x32xf32> to vector<16x16xf32>
    %c0_11 = arith.constant 0 : index
    %c0_12 = arith.constant 0 : index
    %c0_13 = arith.constant 0 : index
    %c0_14 = arith.constant 0 : index
    %16 = vector.load %arg8[%c0_11, %c0_12, %c0_13, %c0_14] : memref<1x16x16x16xf32, #tpu.memory_space<vmem>>, vector<1x16x16x16xf32>
    %17 = vector.shape_cast %16 : vector<1x16x16x16xf32> to vector<16x16x16xf32>
    %c0_15 = arith.constant 0 : index
    %c0_16 = arith.constant 0 : index
    %18 = vector.load %arg4[%c0_15, %c0_16] : memref<1x16xf32, #tpu.memory_space<vmem>>, vector<1x16xf32>
    %19 = vector.shape_cast %18 : vector<1x16xf32> to vector<1x1x16xf32>
    %20 = vector.broadcast %19 : vector<1x1x16xf32> to vector<16x16x16xf32>
    %21 = arith.mulf %17, %20 : vector<16x16x16xf32>
    %cst_17 = arith.constant dense<0.000000e+00> : vector<16x16xf32>
    %22 = vector.multi_reduction <add>, %21, %cst_17 [2] : vector<16x16x16xf32> to vector<16x16xf32>
    %23 = tpu.iota {dimensions = array<i32: 0>} : vector<16x16xi32>
    %24 = vector.broadcast %1 : i32 to vector<16x16xi32>
    %25 = arith.addi %24, %23 : vector<16x16xi32>
    %26 = tpu.iota {dimensions = array<i32: 1>} : vector<16x16xi32>
    %27 = arith.cmpi eq, %25, %26 : vector<16x16xi32>
    %c1 = arith.constant 1 : index
    %28 = memref.load %arg2[%c1] : memref<6xf32, #tpu.memory_space<smem>>
    %c0_18 = arith.constant 0 : index
    %29 = memref.load %arg2[%c0_18] : memref<6xf32, #tpu.memory_space<smem>>
    %30 = vector.broadcast %28 : f32 to vector<16x16xf32>
    %31 = vector.broadcast %29 : f32 to vector<16x16xf32>
    %32 = arith.select %27, %30, %31 : vector<16x16xi1>, vector<16x16xf32>
    %33 = arith.mulf %8, %15 : vector<16x16xf32>
    %34 = arith.mulf %33, %32 : vector<16x16xf32>
    %35 = arith.mulf %34, %22 : vector<16x16xf32>
    %c2 = arith.constant 2 : index
    %36 = memref.load %arg2[%c2] : memref<6xf32, #tpu.memory_space<smem>>
    %37 = vector.broadcast %36 : f32 to vector<16x16xf32>
    %38 = arith.mulf %35, %37 : vector<16x16xf32>
    %c3 = arith.constant 3 : index
    %39 = memref.load %arg2[%c3] : memref<6xf32, #tpu.memory_space<smem>>
    %40 = vector.broadcast %39 : f32 to vector<16x16xf32>
    %41 = arith.addf %38, %40 : vector<16x16xf32>
    %cst_19 = arith.constant 0.000000e+00 : f32
    %42 = vector.broadcast %cst_19 : f32 to vector<16x16xf32>
    %43 = arith.subf %42, %41 : vector<16x16xf32>
    %44 = math.exp %43 : vector<16x16xf32>
    %cst_20 = arith.constant 1.000000e+00 : f32
    %45 = vector.broadcast %cst_20 : f32 to vector<16x16xf32>
    %46 = arith.addf %45, %44 : vector<16x16xf32>
    %47 = tpu.reciprocal %46 {approx = true} : vector<16x16xf32> -> vector<16x16xf32>
    %48 = arith.mulf %41, %47 : vector<16x16xf32>
    %c4 = arith.constant 4 : index
    %49 = memref.load %arg2[%c4] : memref<6xf32, #tpu.memory_space<smem>>
    %50 = vector.broadcast %49 : f32 to vector<16x16xf32>
    %51 = arith.mulf %48, %50 : vector<16x16xf32>
    %c5 = arith.constant 5 : index
    %52 = memref.load %arg2[%c5] : memref<6xf32, #tpu.memory_space<smem>>
    %53 = vector.broadcast %52 : f32 to vector<16x16xf32>
    %54 = arith.addf %51, %53 : vector<16x16xf32>
    %cst_21 = arith.constant 0.000000e+00 : f32
    %55 = vector.broadcast %cst_21 : f32 to vector<16x16xf32>
    %56 = arith.subf %55, %54 : vector<16x16xf32>
    %57 = math.exp %56 : vector<16x16xf32>
    %cst_22 = arith.constant 1.000000e+00 : f32
    %58 = vector.broadcast %cst_22 : f32 to vector<16x16xf32>
    %59 = arith.addf %58, %57 : vector<16x16xf32>
    %60 = tpu.reciprocal %59 {approx = true} : vector<16x16xf32> -> vector<16x16xf32>
    %61 = arith.mulf %54, %60 : vector<16x16xf32>
    %62 = arith.addf %35, %61 : vector<16x16xf32>
    %c0_23 = arith.constant 0 : index
    %c0_24 = arith.constant 0 : index
    %c0_25 = arith.constant 0 : index
    %63 = vector.load %arg9[%c0_23, %c0_24, %c0_25] : memref<1x16x16xf32, #tpu.memory_space<vmem>>, vector<1x16x16xf32>
    %64 = vector.shape_cast %63 : vector<1x16x16xf32> to vector<16x16xf32>
    %65 = vector.shape_cast %62 : vector<16x16xf32> to vector<1x16x16xf32>
    tpu.vector_store %arg9[%c0_23, %c0_24, %c0_25], %65 {strides = array<i32>} : memref<1x16x16xf32, #tpu.memory_space<vmem>>, vector<1x16x16xf32>,
    return
  }
  func.func @transform_0(%arg0: i32, %arg1: i32) -> i32 {
    %c0_i32 = arith.constant 0 : i32
    %c0_i32_0 = arith.constant 0 : i32
    return %c0_i32 : i32
  }
  func.func @transform_1(%arg0: i32, %arg1: i32) -> (i32, i32) {
    %c0_i32 = arith.constant 0 : i32
    %c0_i32_0 = arith.constant 0 : i32
    %c0_i32_1 = arith.constant 0 : i32
    return %c0_i32, %c0_i32_0 : i32, i32
  }
  func.func @transform_2(%arg0: i32, %arg1: i32) -> (i32, i32) {
    %c0_i32 = arith.constant 0 : i32
    %c0_i32_0 = arith.constant 0 : i32
    %c0_i32_1 = arith.constant 0 : i32
    return %c0_i32, %c0_i32_0 : i32, i32
  }
  func.func @transform_3(%arg0: i32, %arg1: i32) -> (i32, i32, i32) {
    %c0_i32 = arith.constant 0 : i32
    %c0_i32_0 = arith.constant 0 : i32
    %c0_i32_1 = arith.constant 0 : i32
    return %arg0, %c0_i32, %c0_i32_0 : i32, i32, i32
  }
  func.func @transform_4(%arg0: i32, %arg1: i32) -> (i32, i32, i32) {
    %c0_i32 = arith.constant 0 : i32
    %c0_i32_0 = arith.constant 0 : i32
    return %arg0, %arg1, %c0_i32 : i32, i32, i32
  }
  func.func @transform_5(%arg0: i32, %arg1: i32) -> (i32, i32, i32, i32) {
    %c0_i32 = arith.constant 0 : i32
    %c0_i32_0 = arith.constant 0 : i32
    %c0_i32_1 = arith.constant 0 : i32
    return %arg0, %arg1, %c0_i32, %c0_i32_0 : i32, i32, i32, i32
  }
  func.func @transform_6(%arg0: i32, %arg1: i32) -> (i32, i32, i32, i32) {
    %c0_i32 = arith.constant 0 : i32
    %c0_i32_0 = arith.constant 0 : i32
    %c0_i32_1 = arith.constant 0 : i32
    return %arg0, %arg1, %c0_i32, %c0_i32_0 : i32, i32, i32, i32
  }
  func.func @transform_7(%arg0: i32, %arg1: i32) -> (i32, i32, i32) {
    %c0_i32 = arith.constant 0 : i32
    %c0_i32_0 = arith.constant 0 : i32
    return %arg0, %arg1, %c0_i32 : i32, i32, i32
  }
}

</mosaic_0001>

<bundles_post_ra>
// kernel: tpu_custom_call.1
= control target key start
LH: loop header
LB: loop body
LE: loop exit
PB: predicated region body
PF: predicated region fallthrough
CT: control target
= control target key end

     0   :  { %s2489_s0 = inlined_call_operand.vmem [shape: f32[6], index: 0, kind: input, shape index: {}]   ;;  %s2490_s1 = inlined_call_operand.vmem [shape: f32[1,32], index: 1, kind: input, shape index: {}]   ;;  %s2491_s2 = inlined_call_operand.vmem [shape: f32[1,16], index: 2, kind: input, shape index: {}]   ;;  %s2492_s3 = inlined_call_operand.vmem [shape: f32[2,1,16], index: 3, kind: input, shape index: {}]   ;;  %s2493_s4 = inlined_call_operand.vmem [shape: f32[2,16,1], index: 4, kind: input, shape index: {}]   ;;  %s2494_s5 = inlined_call_operand.hbm [shape: f32[2,16,16,32], index: 5, kind: input, shape index: {}]   ;;  %s2495_s6 = inlined_call_operand.hbm [shape: f32[2,16,16,16], index: 6, kind: input, shape index: {}]   ;;  %s2496_s7 = inlined_call_operand.hbm [shape: f32[2,16,16], index: 7, kind: output, shape index: {}]  }
   0x1   :  { %2507 = sst [smem:[#allocation18_spill]] %s2489_s0 }
   0x2   :  { %2508 = sst [smem:[#allocation19_spill]] %s2494_s5 }
   0x3   :  { %12 = vsyncpa [#allocation5], 0 }
   0x4   :  { %13 = vsyncpa [#allocation3], 0 }
   0x5   :  { %15 = vsyncpa [#allocation3 + $0x1], 0 }
   0x6   :  { %16 = vsyncpa [#allocation8], 0 }
   0x7   :  { %18 = vsyncpa [#allocation8 + $0x1], 0 }
   0x8   :  { %19 = vsyncpa [#allocation4], 0 }
   0x9   :  { %21 = vsyncpa [#allocation4 + $0x1], 0  ;;  %s1765_s24 = smov 0   ;;  %s1767_s25 = smov 0  }
   0xa   :  { %s1769_s26 = smov 0   ;;  %s1771_s27 = smov 0  }
   0xb   :  { %s1773_s28 = smov 0   ;;  %s1775_s29 = smov 0  }
   0xc LB: > { %2509 = sst [smem:[#allocation14_spill]] %s1702_s26  ;;  %s1413_s30 = sadd.s32 4294967295, %s1714_s29   ;;  %s1714_s29 = sphi %s1775_s29, %s27_s29   ;;  %s1710_s28 = sphi %s1773_s28, %s2539_s28   ;;  %s1706_s27 = sphi %s1771_s27, %s2538_s27   ;;  %s1702_s26 = sphi %s1769_s26, %s2534_s26   ;;  %s1698_s25 = sphi %s1767_s25, %s2537_s25   ;;  %s1694_s24 = sphi %s1765_s24, %s2536_s24  }
   0xd   : > { %2510 = sst [smem:[#allocation15_spill]] %s1714_s29  ;;  %s1414_s8 = sadd.s32 4294967294, %s1714_s29  }
   0xe   : > { %p172_p0 = scmp.ne.s32.totalorder %s1702_s26, %s1698_s25  ;;  %p173_p1 = scmp.eq.s32.totalorder %s1714_s29, 0 }
   0xf   : > { %p178_p2 = scmp.ne.s32.totalorder %s1698_s25, %s1694_s24  ;;  %p1803_p3 = scmp.eq.s32.totalorder %s1413_s30, 0 }
  0x10   : > { %p232_p4 = scmp.eq.s32.totalorder %s1413_s30, 1  ;;  %p1807_p5 = por %p173_p1, %p172_p0 }
  0x11   : > { %s2511_s10 = scalar_select %p1803_p3, 1, 0 }
  0x12   : > { %p238_p6 = scmp.eq.s32.totalorder %s1414_s8, 1  ;;  %p1813_p7 = por %p1803_p3, %p178_p2 }
  0x13   : > { %p1817_p8 = por %p232_p4, %p172_p0  ;;  %p1415_p10 = scmp.ge.s32.totalorder %s1714_s29, 1 }
  0x14   : > { %s2513_s12 = scalar_select %p1813_p7, 1, 0 }
  0x15   : > { %s2514_s13 = scalar_select %p1817_p8, 1, 0 }
  0x16   : > { %p1821_p9 = por %p238_p6, %p178_p2  ;;  %p245_p11 = scmp.lt.s32.totalorder %s1714_s29, 3 }
  0x17   : > { %s2516_s0 = sld [smem:[#allocation18_spill]]  ;;  %p1474_p0 = scmp.lt.s32.totalorder %s1714_s29, 2 }
  0x18   : > { %s2515_s14 = scalar_select %p1821_p9, 1, 0 }
  0x19   : > { %p1830_p12 = pnand %p1415_p10, %p245_p11  ;;  %p1840_p2 = pnand %p1474_p0, %p1807_p5 }
  0x1a   : > { %s39_s21 = sadd.s32 1, %s1710_s28  ;;  %s1856_s23 = sand.u32 1, %s1702_s26  }
  0x1b   : > { %p1458_p1 = pneg %p1830_p12  ;;  %p1851_p6 = scmp.ge.s32.totalorder %s39_s21, 2 }
  0x1d   : > { %s258_s17 = sshll.u32 %s2516_s0, 4  ;;  %p1846_p4 = pnand %p1458_p1, %p1803_p3  ;;  %s259_s17 = int_to_ptr.vmem [resolvable:$true] %s258_s17 }
  0x1e   : > { %s1549_s30 = scalar_lea.vmem %s259_s17, 16  ;;  %p1557_p13 = scmp.lt.s32.totalorder %s259_s17, %s259_s17 }
  0x1f   : > { %p1550_p10 = scmp.ne.s32.totalorder %s259_s17, %s1549_s30  ;;  %p1551_p5 = pneg %p1846_p4 }
  0x20   : > { %p1558_p9 = scmp.lt.s32.totalorder %s1549_s30, %s1549_s30 }
  0x21   : > { %p1552_p11 = pnand %p1551_p5, %p1550_p10 }
  0x22   : > { %p1559_p1 = por %p1558_p9, %p1557_p13 }
  0x23   : > { %p1553_p0 = pneg %p1552_p11 }
  0x25   : > { %p1560_p8 = pnand %p1559_p1, %p1553_p0 }
  0x27   : > { %1563 = shalt.err (!%p1560_p8)
}
  0x28   : > { %s1716_s8 = smov [#allocation2]   ;;  %s2541_s21 = smov (%p1851_p6, %s39_s21), 0 }
  0x29   : > { %1461 = dma.vmem_to_smem (!%p1846_p4), %s259_s17, 16, %s1716_s8, [#allocation5]  }
  0x2a   : > { %2521 = sst [smem:[#allocation16_spill]] %s2541_s21  ;;  %s2500_s11 = sshll.u32 %s1856_s23, 8 }
  0x2b   : > { %s160_s15 = ssub.s32 %s1710_s28, %s2541_s21  ;;  %s2499_s16 = sshll.u32 %s1710_s28, 12 }
  0x2c   : > { %p163_p8 = scmp.eq.s32.totalorder %s160_s15, 0  ;;  %s2522_s5 = sld [smem:[#allocation19_spill]] }
  0x2d   : > { %s298_s17 = scalar_lea.vmem [#allocation6], %s2500_s11  ;;  %s2523_s8 = sadd.s32 1, %s1702_s26 }
  0x2e   : > { %s308_s22 = sshll.u32 %s298_s17, 4  ;;  %s295_s15 = scalar_lea.sflag [#allocation3], %s1856_s23  ;;  %s1884_s22 = int_to_ptr.vmem [resolvable:$true] %s308_s22 }
  0x2f   : > { %s1882_s0 = scalar_select %p163_p8, %s1702_s26, %s2523_s8  }
  0x30   : > { %p1566_p13 = pneg %p1840_p2 }
  0x31   : > { %2524 = sst [smem:[#allocation17_spill]] %s1882_s0 }
  0x32   : > { %s1875_s9 = scalar_lea.hbm %s2522_s5, %s2499_s16  ;;  %s1569_s16 = scalar_lea.hbm %s2522_s5, 8192 }
  0x33   : > { %s1564_s21 = scalar_lea.hbm %s1875_s9, 4096  ;;  %p1570_p10 = scmp.lt.u32.totalorder %s1875_s9, %s2522_s5 }
  0x34   : > { %p1565_p9 = scmp.ne.s32.totalorder %s1875_s9, %s1564_s21  ;;  %p1571_p5 = scmp.lt.u32.totalorder %s1569_s16, %s1564_s21 }
  0x35   : > { %p1573_p0 = scmp.lt.u32.totalorder %s1564_s21, %s1875_s9 }
  0x36   : > { %p1567_p4 = pnand %p1566_p13, %p1565_p9  ;;  %p1572_p11 = por %p1571_p5, %p1570_p10 }
  0x38   : > { %p1568_p6 = pneg %p1567_p4  ;;  %p1574_p1 = por %p1573_p0, %p1572_p11 }
  0x3a   : > { %p1575_p8 = pnand %p1574_p1, %p1568_p6 }
  0x3c   : > { %1578 = shalt.err (!%p1575_p8)
}
  0x3d   : > { %s1579_s8 = scalar_lea.vmem %s1884_s22, 4096  ;;  %s1717_s20 = smov [#allocation6]  }
  0x3e   : > { %p1580_p9 = scmp.ne.s32.totalorder %s1884_s22, %s1579_s8  ;;  %s1584_s30 = sshll.u32 %s1717_s20, 4  ;;  %s1585_s30 = int_to_ptr.vmem [resolvable:$false] %s1584_s30 }
  0x3f   : > { %s1586_s11 = scalar_lea.vmem %s1585_s30, 8192  ;;  %p1587_p3 = scmp.lt.s32.totalorder %s1884_s22, %s1585_s30 }
  0x40   : > { %p1582_p4 = pnand %p1580_p9, %p1566_p13  ;;  %p1588_p10 = scmp.lt.s32.totalorder %s1586_s11, %s1579_s8 }
  0x42   : > { %p1583_p7 = pneg %p1582_p4  ;;  %p1589_p5 = por %p1588_p10, %p1587_p3 }
  0x44   : > { %p1590_p11 = pnand %p1589_p5, %p1583_p7 }
  0x46   : > { %1593 = shalt.err (!%p1590_p11)
}
  0x47   : > { %s1718_s21 = smov 128   ;;  %s1719_s16 = smov 8  }
  0x48   : > { %1465 = dma.hbm_to_vmem [thread:$0]  (!%p1840_p2), %s1875_s9, 4096, %s1884_s22, %s295_s15, %s1718_s21, %s1718_s21, %s1719_s16  }
  0x49   : > { %s2525_s17 = sshll.u32 %s1710_s28, 12  ;;  %s2526_s11 = sshll.u32 %s1856_s23, 8 }
  0x4a   : > { %s1922_s30 = scalar_lea.hbm %s2495_s6, %s2525_s17  ;;  %s322_s5 = scalar_lea.vmem [#allocation7], %s2526_s11 }
  0x4b   : > { %s332_s0 = sshll.u32 %s322_s5, 4  ;;  %s319_s26 = scalar_lea.sflag [#allocation8], %s1856_s23  ;;  %s1926_s0 = int_to_ptr.vmem [resolvable:$true] %s332_s0 }
  0x4c   : > { %s1594_s29 = scalar_lea.hbm %s1922_s30, 4096  ;;  %s1599_s15 = scalar_lea.hbm %s2495_s6, 8192 }
  0x4d   : > { %p1595_p3 = scmp.ne.s32.totalorder %s1922_s30, %s1594_s29  ;;  %p1600_p0 = scmp.lt.u32.totalorder %s1922_s30, %s2495_s6 }
  0x4e   : > { %p1601_p1 = scmp.lt.u32.totalorder %s1599_s15, %s1594_s29  ;;  %p1603_p9 = scmp.lt.u32.totalorder %s1594_s29, %s1922_s30 }
  0x4f   : > { %p1597_p7 = pnand %p1595_p3, %p1566_p13 }
  0x50   : > { %p1602_p8 = por %p1601_p1, %p1600_p0 }
  0x51   : > { %p1598_p6 = pneg %p1597_p7 }
  0x52   : > { %p1604_p4 = por %p1603_p9, %p1602_p8 }
  0x54   : > { %p1605_p10 = pnand %p1604_p4, %p1598_p6 }
  0x56   : > { %1608 = shalt.err (!%p1605_p10)
}
  0x57   : > { %s1609_s5 = scalar_lea.vmem %s1926_s0, 4096  ;;  %s1720_s20 = smov [#allocation7]  }
  0x58   : > { %p1610_p5 = scmp.ne.s32.totalorder %s1926_s0, %s1609_s5  ;;  %s1614_s11 = sshll.u32 %s1720_s20, 4  ;;  %s1615_s11 = int_to_ptr.vmem [resolvable:$false] %s1614_s11 }
  0x59   : > { %s1616_s9 = scalar_lea.vmem %s1615_s11, 8192  ;;  %p1617_p7 = scmp.lt.s32.totalorder %s1926_s0, %s1615_s11 }
  0x5a   : > { %p1612_p11 = pnand %p1610_p5, %p1566_p13  ;;  %p1618_p0 = scmp.lt.s32.totalorder %s1616_s9, %s1609_s5 }
  0x5c   : > { %p1613_p3 = pneg %p1612_p11  ;;  %p1619_p1 = por %p1618_p0, %p1617_p7 }
  0x5e   : > { %p1620_p8 = pnand %p1619_p1, %p1613_p3 }
  0x60   : > { %1623 = shalt.err (!%p1620_p8)
}
  0x61   : > { %1468 = dma.hbm_to_vmem [thread:$0]  (!%p1840_p2), %s1922_s30, 4096, %s1926_s0, %s319_s26, %s1718_s21, %s1718_s21, %s1719_s16  }
  0x62   : > { %344 = sbr.rel (%p1830_p12) target bundleno = 486 (0x1e6), region = 48  ;;  %p2527_p13 = scmp.ne.s32.totalorder (!%p1830_p12), %s2511_s10, 0 }
  0x69   : > { %1677 = dma.done.wait (%p2527_p13), [#allocation5], 16  }
  0x6a   : > { %1679 = vsyncadd (%p2527_p13), [#allocation5], 4294967280  ;;  %s1964_s29 = sand.u32 1, %s1698_s25   ;;  %p2528_p2 = scmp.ne.s32.totalorder %s2513_s12, 0 }
  0x6b   : > { %s1426_s19 = sshll.u32 %s1964_s29, 8  ;;  %s351_s23 = scalar_lea.sflag [#allocation3], %s1964_s29 }
  0x6c   : > { %s1968_s22 = scalar_lea.vmem [#allocation6], %s1426_s19 }
  0x6d   : > { %1681 = dma.done.wait (%p2528_p2), %s351_s23, 4096  }
  0x6e   : > { %1683 = vsyncadd (%p2528_p2), %s351_s23, 4294963200  ;;  %s360_s0 = scalar_lea.sflag [#allocation8], %s1964_s29  ;;  %s1975_s26 = scalar_lea.vmem [#allocation7], %s1426_s19 }
  0x6f   : > { %1685 = dma.done.wait (%p2528_p2), %s360_s0, 4096  }
  0x70   : > { %1687 = vsyncadd (%p2528_p2), %s360_s0, 4294963200 }
  0x71   : > { %368 = sfence }
  0x72   : > { %v452_v0 = vld [vmem:[%s1968_s22 + $0x10] sm:$0xff]  ;;  %v1985_v1 = vld [vmem:[%s2490_s1] ss:$0 sm:$0xff]  ;;  %vm521_vm0 = vcmask 261120   ;;  %v453_v5 = vld [vmem:[%s1968_s22 + $0x18] sm:$0xff]  ;;  %vm689_vm1 = vcmask 130048  }
  0x73   : > { %v450_v2 = vld [vmem:[%s1968_s22] sm:$0xff]  ;;  %v491_v3 = vmul.f32 %v1985_v1, %v452_v0  ;;  %v451_v6 = vld [vmem:[%s1968_s22 + $0x8] sm:$0xff]  ;;  %v492_v7 = vmul.f32 %v1985_v1, %v453_v5  ;;  %v469_v17 = vld [vmem:[%s1968_s22 + $0x98] sm:$0xff]  ;;  %p412_p12 = scmp.lt.s32.totalorder %s1706_s27, 1  ;;  %vm843_vm2 = vcmask 130112   ;;  %vm980_vm3 = vcmask 1041409  }
  0x74   : > { %v489_v4 = vmul.f32 %v1985_v1, %v450_v2  ;;  %v490_v8 = vmul.f32 %v1985_v1, %v451_v6  ;;  %v467_v9 = vld [vmem:[%s1968_s22 + $0x88] sm:$0xff]  ;;  %v466_v10 = vld [vmem:[%s1968_s22 + $0x80] sm:$0xff]  ;;  %v468_v18 = vld [vmem:[%s1968_s22 + $0x90] sm:$0xff]  ;;  %v508_v21 = vmul.f32 %v1985_v1, %v469_v17  ;;  %vm982_vm4 = vcmask 1042434   ;;  %s2317_s5 = sld [smem:[#allocation2 + $0x1]]  ;;  %s2319_s20 = sld [smem:[#allocation2]] }
  0x75   : > { %v528_v11 = vsel %vm521_vm0, %v491_v3, 0.0  ;;  %v531_v13 = vsel %vm521_vm0, %v492_v7, 0.0  ;;  %v506_v15 = vmul.f32 %v1985_v1, %v467_v9  ;;  %v505_v16 = vmul.f32 %v1985_v1, %v466_v10  ;;  %v455_v23 = vld [vmem:[%s1968_s22 + $0x28] sm:$0xff]  ;;  %v454_v24 = vld [vmem:[%s1968_s22 + $0x20] sm:$0xff]  ;;  %v457_v39 = vld [vmem:[%s1968_s22 + $0x38] sm:$0xff]  ;;  %s2209_s16 = scalar_select %p412_p12, %s1706_s27, 1 }
  0x76   : > { %v522_v12 = vsel %vm521_vm0, %v489_v4, 0.0  ;;  %529 = vadd.xlane.f32.xlu1 %v528_v11  ;;  %v525_v14 = vsel %vm521_vm0, %v490_v8, 0.0  ;;  %v507_v22 = vmul.f32 %v1985_v1, %v468_v18  ;;  %v579_v25 = vsel %vm521_vm0, %v508_v21, 0.0  ;;  %v471_v29 = vld [vmem:[%s1968_s22 + $0xa8] sm:$0xff]  ;;  %v470_v30 = vld [vmem:[%s1968_s22 + $0xa0] sm:$0xff]  ;;  %v456_v40 = vld [vmem:[%s1968_s22 + $0x30] sm:$0xff] }
  0x77   : > { %523 = vadd.xlane.f32.xlu0 %v522_v12  ;;  %v573_v19 = vsel %vm521_vm0, %v506_v15, 0.0  ;;  %v570_v20 = vsel %vm521_vm0, %v505_v16, 0.0  ;;  %v494_v27 = vmul.f32 %v1985_v1, %v455_v23  ;;  %v493_v28 = vmul.f32 %v1985_v1, %v454_v24  ;;  %v463_v31 = vld [vmem:[%s1968_s22 + $0x68] sm:$0xff]  ;;  %v462_v32 = vld [vmem:[%s1968_s22 + $0x60] sm:$0xff]  ;;  %v465_v45 = vld [vmem:[%s1968_s22 + $0x78] sm:$0xff]  ;;  %s1446_s30 = sshll.u32 %s2209_s16, 4  ;;  %s414_s23 = scalar_lea.vmem %s2492_s3, %s2209_s16 }
  0x78   : > { %v576_v26 = vsel %vm521_vm0, %v507_v22, 0.0  ;;  %v479_v33 = vld [vmem:[%s1968_s22 + $0xe8] sm:$0xff]  ;;  %v478_v34 = vld [vmem:[%s1968_s22 + $0xe0] sm:$0xff]  ;;  %v510_v35 = vmul.f32 %v1985_v1, %v471_v29  ;;  %v509_v36 = vmul.f32 %v1985_v1, %v470_v30  ;;  %v502_v41 = vmul.f32 %v1985_v1, %v463_v31  ;;  %v464_v46 = vld [vmem:[%s1968_s22 + $0x70] sm:$0xff]  ;;  %s423_s8 = scalar_lea.vmem %s2493_s4, %s1446_s30  ;;  %s2326_s11 = sld [smem:[#allocation2 + $0x2]] }
  0x79   : > { %v537_v37 = vsel %vm521_vm0, %v494_v27, 0.0  ;;  %v534_v38 = vsel %vm521_vm0, %v493_v28, 0.0  ;;  %v501_v42 = vmul.f32 %v1985_v1, %v462_v32  ;;  %v518_v43 = vmul.f32 %v1985_v1, %v479_v33  ;;  %v481_v49 = vld [vmem:[%s1968_s22 + $0xf8] sm:$0xff]  ;;  %v480_v50 = vld [vmem:[%s1968_s22 + $0xf0] sm:$0xff]  ;;  %v459_v8 = vld [vmem:[%s1968_s22 + $0x48] sm:$0xff]  ;;  %s1437_s0 = sld [smem:[#allocation2 + $0x4]] }
  0x7a   : > { %532 = vadd.xlane.f32.xlu1 %v531_v13  ;;  %v517_v44 = vmul.f32 %v1985_v1, %v478_v34  ;;  %v2033_v47 = vsel %vm521_vm0, %v502_v41, 0.0  ;;  %v496_v51 = vmul.f32 %v1985_v1, %v457_v39  ;;  %v495_v52 = vmul.f32 %v1985_v1, %v456_v40  ;;  %v473_v59 = vld [vmem:[%s1968_s22 + $0xb8] sm:$0xff]  ;;  %v472_v60 = vld [vmem:[%s1968_s22 + $0xb0] sm:$0xff]  ;;  %v458_v9 = vld [vmem:[%s1968_s22 + $0x40] sm:$0xff]  ;;  %s1428_s10 = sshll.u32 %s1964_s29, 4  ;;  %s1447_s18 = sshll.u32 %s1706_s27, 8 }
  0x7b   : > { %526 = vadd.xlane.f32.xlu0 %v525_v14  ;;  %v2036_v48 = vsel %vm521_vm0, %v501_v42, 0.0  ;;  %v2043_v53 = vsel %vm521_vm0, %v518_v43, 0.0  ;;  %v585_v55 = vsel %vm521_vm0, %v510_v35, 0.0  ;;  %v582_v56 = vsel %vm521_vm0, %v509_v36, 0.0  ;;  %v475_v14 = vld [vmem:[%s1968_s22 + $0xc8] sm:$0xff]  ;;  %v474_v15 = vld [vmem:[%s1968_s22 + $0xc0] sm:$0xff]  ;;  %s2437_s15 = scalar_lea.hbm %s2496_s7, %s1447_s18 }
  0x7c   : > { %v2046_v54 = vsel %vm521_vm0, %v517_v44, 0.0  ;;  %v504_v57 = vmul.f32 %v1985_v1, %v465_v45  ;;  %v503_v58 = vmul.f32 %v1985_v1, %v464_v46  ;;  %v520_v61 = vmul.f32 %v1985_v1, %v481_v49  ;;  %v460_v21 = vld [vmem:[%s1968_s22 + $0x50] sm:$0xff]  ;;  %v477_v27 = vld [vmem:[%s1968_s22 + $0xd8] sm:$0xff]  ;;  %v619_v33 = vld [vmem:[%s1975_s26 + $0x8] sm:$0xff]  ;;  %s411_s12 = scalar_lea.vmem [#allocation9], %s1428_s10  ;;  %s1246_s27 = scalar_lea.sflag [#allocation4], %s1964_s29 }
  0x7d   : > { %v519_v62 = vmul.f32 %v1985_v1, %v480_v50  ;;  %v543_v4 = vsel %vm521_vm0, %v496_v51, 0.0  ;;  %v540_v5 = vsel %vm521_vm0, %v495_v52, 0.0  ;;  %v512_v6 = vmul.f32 %v1985_v1, %v473_v59  ;;  %v476_v28 = vld [vmem:[%s1968_s22 + $0xd0] sm:$0xff]  ;;  %v2100_v34 = vld [vmem:[%s2491_s2] ss:$0 sm:$0xff]  ;;  %v635_v45 = vld [vmem:[%s1975_s26 + $0x88] sm:$0xff] }
  0x7e   : > { %574 = vadd.xlane.f32.xlu1 %v573_v19  ;;  %v2057_v63 = vsel %vm521_vm0, %v504_v57, 0.0  ;;  %v2060_v0 = vsel %vm521_vm0, %v503_v58, 0.0  ;;  %v2063_v2 = vsel %vm521_vm0, %v520_v61, 0.0  ;;  %v511_v7 = vmul.f32 %v1985_v1, %v472_v60  ;;  %v618_v35 = vld [vmem:[%s1975_s26] sm:$0xff]  ;;  %v620_v40 = vld [vmem:[%s1975_s26 + $0x10] sm:$0xff]  ;;  %s1261_s21 = sshll.u32 %s411_s12, 4  ;;  %s2439_s21 = int_to_ptr.vmem [resolvable:$true] %s1261_s21 }
  0x7f   : > { %571 = vadd.xlane.f32.xlu0 %v570_v20  ;;  %v2066_v3 = vsel %vm521_vm0, %v519_v62, 0.0  ;;  %v591_v10 = vsel %vm521_vm0, %v512_v6, 0.0  ;;  %v498_v12 = vmul.f32 %v1985_v1, %v459_v8  ;;  %v497_v13 = vmul.f32 %v1985_v1, %v458_v9  ;;  %v461_v20 = vld [vmem:[%s1968_s22 + $0x58] sm:$0xff]  ;;  %v634_v46 = vld [vmem:[%s1975_s26 + $0x80] sm:$0xff]  ;;  %v639_v8 = vld [vmem:[%s1975_s26 + $0xa8] sm:$0xff]  ;;  %s2389_s22 = sld [smem:[#allocation2 + $0x3]] }
  0x80   : > { %v588_v11 = vsel %vm521_vm0, %v511_v7, 0.0  ;;  %v514_v16 = vmul.f32 %v1985_v1, %v475_v14  ;;  %v513_v19 = vmul.f32 %v1985_v1, %v474_v15  ;;  %v1721_v22 = vmov 0   ;;  %v638_v9 = vld [vmem:[%s1975_s26 + $0xa0] sm:$0xff]  ;;  %s1624_s17 = scalar_lea.vmem %s2439_s21, 256  ;;  %p2529_p9 = scmp.ne.s32.totalorder %s2514_s13, 0 }
  0x81   : > { %v549_v17 = vsel %vm521_vm0, %v498_v12, 0.0  ;;  %v546_v18 = vsel %vm521_vm0, %v497_v13, 0.0  ;;  %1532 = vset.pattern.permute.xlu1 %v1721_v22  ;;  %1531 = vset.pattern.permute.xlu0 %v1721_v22  ;;  %v516_v31 = vmul.f32 %v1985_v1, %v477_v27  ;;  %v515_v32 = vmul.f32 %v1985_v1, %v476_v28  ;;  %p1625_p6 = scmp.ne.s32.totalorder %s2439_s21, %s1624_s17 }
  0x82   : > { %580 = vadd.xlane.f32.xlu1 %v579_v25  ;;  %v597_v23 = vsel %vm521_vm0, %v514_v16, 0.0  ;;  %v594_v24 = vsel %vm521_vm0, %v513_v19, 0.0  ;;  %v500_v25 = vmul.f32 %v1985_v1, %v461_v20  ;;  %v657_v39 = vmul.f32 %v2100_v34, %v618_v35  ;;  %v641_v16 = vld [vmem:[%s1975_s26 + $0xb8] sm:$0xff]  ;;  %v627_v20 = vld [vmem:[%s1975_s26 + $0x48] sm:$0xff] }
  0x83   : > { %577 = vadd.xlane.f32.xlu0 %v576_v26  ;;  %v499_v26 = vmul.f32 %v1985_v1, %v460_v21  ;;  %v603_v36 = vsel %vm521_vm0, %v516_v31, 0.0  ;;  %v621_v1 = vld [vmem:[%s1975_s26 + $0x18] sm:$0xff]  ;;  %v659_v44 = vmul.f32 %v2100_v34, %v620_v40  ;;  %v674_v51 = vmul.f32 %v2100_v34, %v635_v45  ;;  %v626_v21 = vld [vmem:[%s1975_s26 + $0x40] sm:$0xff]  ;;  %v628_v31 = vld [vmem:[%s1975_s26 + $0x50] sm:$0xff]  ;;  %p1626_p4 = pnand %p1625_p6, %p2529_p9 }
  0x84   : > { %v555_v29 = vsel %vm521_vm0, %v500_v25, 0.0  ;;  %v690_v42 = vsel %vm689_vm1, %v657_v39, 0.0  ;;  %v660_v43 = vmul.f32 %v2100_v34, %v621_v1  ;;  %v673_v52 = vmul.f32 %v2100_v34, %v634_v46  ;;  %v642_v25 = vld [vmem:[%s1975_s26 + $0xc0] sm:$0xff] }
  0x85   : > { %v552_v30 = vsel %vm521_vm0, %v499_v26, 0.0  ;;  %v696_v50 = vsel %vm689_vm1, %v659_v44, 0.0  ;;  %v741_v57 = vsel %vm689_vm1, %v674_v51, 0.0  ;;  %v646_v51 = vld [vmem:[%s1975_s26 + $0xe0] sm:$0xff]  ;;  %vm984_vm5 = vcmask 1043459   ;;  %p1627_p10 = pneg %p1626_p4 }
  0x86   : > { %538 = vadd.xlane.f32.xlu1 %v537_v37  ;;  %v600_v37 = vsel %vm521_vm0, %v515_v32, 0.0  ;;  %v699_v49 = vsel %vm689_vm1, %v660_v43, 0.0  ;;  %v738_v58 = vsel %vm689_vm1, %v673_v52, 0.0  ;;  %v630_v43 = vld [vmem:[%s1975_s26 + $0x60] sm:$0xff]  ;;  %vm986_vm6 = vcmask 1044484  }
  0x87   : > { %535 = vadd.xlane.f32.xlu0 %v534_v38  ;;  %v658_v38 = vmul.f32 %v2100_v34, %v619_v33  ;;  %vm988_vm7 = vcmask 1045509   ;;  %vm990_vm8 = vcmask 1046534   ;;  %vm992_vm10 = vcmask 1047559  }
  0x89   : > { %v693_v41 = vsel %vm689_vm1, %v658_v38, 0.0  ;;  %v644_v38 = vld [vmem:[%s1975_s26 + $0xd0] sm:$0xff] }
  0x8a   : > { %586 = vadd.xlane.f32.xlu1 %v585_v55  ;;  %v637_v55 = vld [vmem:[%s1975_s26 + $0x98] sm:$0xff] }
  0x8b   : > { %583 = vadd.xlane.f32.xlu0 %v582_v56  ;;  %v636_v56 = vld [vmem:[%s1975_s26 + $0x90] sm:$0xff]  ;;  %v676_v59 = vmul.f32 %v2100_v34, %v637_v55 }
  0x8c   : > { %v675_v60 = vmul.f32 %v2100_v34, %v636_v56 }
  0x8d   : > { %v747_v61 = vsel %vm689_vm1, %v676_v59, 0.0  ;;  %v632_v59 = vld [vmem:[%s1975_s26 + $0x70] sm:$0xff] }
  0x8e   : > { %544 = vadd.xlane.f32.xlu1 %v543_v4  ;;  %v744_v62 = vsel %vm689_vm1, %v675_v60, 0.0  ;;  %v623_v4 = vld [vmem:[%s1975_s26 + $0x28] sm:$0xff] }
  0x8f   : > { %541 = vadd.xlane.f32.xlu0 %v540_v5  ;;  %v622_v5 = vld [vmem:[%s1975_s26 + $0x20] sm:$0xff]  ;;  %v662_v6 = vmul.f32 %v2100_v34, %v623_v4  ;;  %v671_v4 = vmul.f32 %v2100_v34, %v632_v59 }
  0x90   : > { %v661_v7 = vmul.f32 %v2100_v34, %v622_v5  ;;  %v649_v5 = vld [vmem:[%s1975_s26 + $0xf8] sm:$0xff] }
  0x92   : > { %592 = vadd.xlane.f32.xlu1 %v591_v10  ;;  %v705_v10 = vsel %vm689_vm1, %v662_v6, 0.0  ;;  %v648_v6 = vld [vmem:[%s1975_s26 + $0xf0] sm:$0xff] }
  0x93   : > { %589 = vadd.xlane.f32.xlu0 %v588_v11  ;;  %v702_v11 = vsel %vm689_vm1, %v661_v7, 0.0 }
  0x96   : > { %550 = vadd.xlane.f32.xlu1 %v549_v17  ;;  %v640_v17 = vld [vmem:[%s1975_s26 + $0xb0] sm:$0xff] }
  0x97   : > { %547 = vadd.xlane.f32.xlu0 %v546_v18 }
  0x9a   : > { %598 = vadd.xlane.f32.xlu1 %v597_v23  ;;  %v665_v23 = vmul.f32 %v2100_v34, %v626_v21 }
  0x9b   : > { %595 = vadd.xlane.f32.xlu0 %v594_v24  ;;  %v643_v24 = vld [vmem:[%s1975_s26 + $0xc8] sm:$0xff] }
  0x9c   : > { %v714_v27 = vsel %vm689_vm1, %v665_v23, 0.0  ;;  %v682_v28 = vmul.f32 %v2100_v34, %v643_v24 }
  0x9e   : > { %556 = vadd.xlane.f32.xlu1 %v555_v29  ;;  %v681_v29 = vmul.f32 %v2100_v34, %v642_v25  ;;  %v765_v32 = vsel %vm689_vm1, %v682_v28, 0.0 }
  0x9f   : > { %553 = vadd.xlane.f32.xlu0 %v552_v30  ;;  %v629_v30 = vld [vmem:[%s1975_s26 + $0x58] sm:$0xff] }
  0xa0   : > { %v762_v33 = vsel %vm689_vm1, %v681_v29, 0.0  ;;  %v668_v35 = vmul.f32 %v2100_v34, %v629_v30 }
  0xa2   : > { %604 = vadd.xlane.f32.xlu1 %v603_v36  ;;  %v667_v36 = vmul.f32 %v2100_v34, %v628_v31  ;;  %v723_v39 = vsel %vm689_vm1, %v668_v35, 0.0 }
  0xa3   : > { %601 = vadd.xlane.f32.xlu0 %v600_v37  ;;  %v645_v37 = vld [vmem:[%s1975_s26 + $0xd8] sm:$0xff] }
  0xa4   : > { %v720_v1 = vsel %vm689_vm1, %v667_v36, 0.0  ;;  %v684_v40 = vmul.f32 %v2100_v34, %v645_v37 }
  0xa6   : > { %694 = vadd.xlane.f32.xlu1 %v693_v41  ;;  %v683_v41 = vmul.f32 %v2100_v34, %v644_v38  ;;  %v771_v44 = vsel %vm689_vm1, %v684_v40, 0.0 }
  0xa7   : > { %691 = vadd.xlane.f32.xlu0 %v690_v42  ;;  %v631_v42 = vld [vmem:[%s1975_s26 + $0x68] sm:$0xff] }
  0xa8   : > { %v768_v45 = vsel %vm689_vm1, %v683_v41, 0.0  ;;  %v670_v46 = vmul.f32 %v2100_v34, %v631_v42 }
  0xaa   : > { %700 = vadd.xlane.f32.xlu1 %v699_v49  ;;  %v669_v49 = vmul.f32 %v2100_v34, %v630_v43  ;;  %v729_v52 = vsel %vm689_vm1, %v670_v46, 0.0 }
  0xab   : > { %697 = vadd.xlane.f32.xlu0 %v696_v50  ;;  %v647_v50 = vld [vmem:[%s1975_s26 + $0xe8] sm:$0xff] }
  0xac   : > { %v726_v55 = vsel %vm689_vm1, %v669_v49, 0.0  ;;  %v686_v56 = vmul.f32 %v2100_v34, %v647_v50 }
  0xae   : > { %742 = vadd.xlane.f32.xlu1 %v741_v57  ;;  %v685_v57 = vmul.f32 %v2100_v34, %v646_v51  ;;  %v777_v60 = vsel %vm689_vm1, %v686_v56, 0.0 }
  0xaf   : > { %739 = vadd.xlane.f32.xlu0 %v738_v58  ;;  %v633_v58 = vld [vmem:[%s1975_s26 + $0x78] sm:$0xff] }
  0xb2   : > { %748 = vadd.xlane.f32.xlu1 %v747_v61  ;;  %v774_v61 = vsel %vm689_vm1, %v685_v57, 0.0 }
  0xb3   : > { %745 = vadd.xlane.f32.xlu0 %v744_v62  ;;  %v672_v62 = vmul.f32 %v2100_v34, %v633_v58 }
  0xb5   : > { %v735_v7 = vsel %vm689_vm1, %v672_v62, 0.0 }
  0xb6   : > { %562 = vadd.xlane.f32.xlu1 %v2033_v47  ;;  %v678_v47 = vmul.f32 %v2100_v34, %v639_v8  ;;  %v732_v8 = vsel %vm689_vm1, %v671_v4, 0.0 }
  0xb7   : > { %559 = vadd.xlane.f32.xlu0 %v2036_v48  ;;  %v677_v48 = vmul.f32 %v2100_v34, %v638_v9  ;;  %v688_v9 = vmul.f32 %v2100_v34, %v649_v5 }
  0xb8   : > { %v753_v12 = vsel %vm689_vm1, %v678_v47, 0.0 }
  0xb9   : > { %v750_v13 = vsel %vm689_vm1, %v677_v48, 0.0  ;;  %v786_v48 = vlaneseq }
  0xba   : > { %610 = vadd.xlane.f32.xlu1 %v2043_v53  ;;  %v625_v53 = vld [vmem:[%s1975_s26 + $0x38] sm:$0xff] }
  0xbb   : > { %607 = vadd.xlane.f32.xlu0 %v2046_v54  ;;  %v624_v54 = vld [vmem:[%s1975_s26 + $0x30] sm:$0xff]  ;;  %v664_v14 = vmul.f32 %v2100_v34, %v625_v53  ;;  %s1438_s26 = sld [smem:[#allocation2 + $0x5]] }
  0xbc   : > { %v663_v15 = vmul.f32 %v2100_v34, %v624_v54 }
  0xbd   : > { %v711_v18 = vsel %vm689_vm1, %v664_v14, 0.0 }
  0xbe   : > { %706 = vadd.xlane.f32.xlu1 %v705_v10  ;;  %v708_v19 = vsel %vm689_vm1, %v663_v15, 0.0  ;;  %v687_v10 = vmul.f32 %v2100_v34, %v648_v6 }
  0xbf   : > { %703 = vadd.xlane.f32.xlu0 %v702_v11  ;;  %v783_v11 = vsel %vm689_vm1, %v688_v9, 0.0 }
  0xc0   : > { %v780_v47 = vsel %vm689_vm1, %v687_v10, 0.0 }
  0xc2   : > { %754 = vadd.xlane.f32.xlu1 %v753_v12  ;;  %v2215_v12 = vand.u32 127, %v786_v48 }
  0xc3   : > { %751 = vadd.xlane.f32.xlu0 %v750_v13  ;;  %v430_v13 = vld [vmem:[%s423_s8 + $0x8] sm:$0xff] }
  0xc4   : > { %v838_v53 = vadd.s32 4294967288, %v2215_v12 }
  0xc6   : > { %568 = vadd.xlane.f32.xlu1 %v2057_v63  ;;  %v680_v63 = vmul.f32 %v2100_v34, %v641_v16 }
  0xc7   : > { %565 = vadd.xlane.f32.xlu0 %v2060_v0  ;;  %v679_v0 = vmul.f32 %v2100_v34, %v640_v17  ;;  %v429_v17 = vld [vmem:[%s423_s8] sm:$0xff]  ;;  %s1722_s8 = smov [#allocation9]  }
  0xc8   : > { %v759_v22 = vsel %vm689_vm1, %v680_v63, 0.0 }
  0xca   : > { %616 = vadd.xlane.f32.xlu1 %v2063_v2  ;;  %v756_v2 = vsel %vm689_vm1, %v679_v0, 0.0 }
  0xcb   : > { %613 = vadd.xlane.f32.xlu0 %v2066_v3  ;;  %v666_v3 = vmul.f32 %v2100_v34, %v627_v20  ;;  %v2217_v34 = vshrl.u32 %v786_v48, 7 }
  0xcd   : > { %v717_v26 = vsel %vm689_vm1, %v666_v3, 0.0  ;;  %v2222_v15 = vsub.s32 %v2215_v12, %v2217_v34  ;;  %v2225_v16 = vsub.s32 %v838_v53, %v2217_v34  ;;  %vm794_vm11 = vcmp.eq.s32.totalorder %v2217_v34, %v2215_v12 }
  0xce   : > { %712 = vadd.xlane.f32.xlu1 %v711_v18 }
  0xcf   : > { %709 = vadd.xlane.f32.xlu0 %v708_v19 }
  0xd2   : > { %760 = vadd.xlane.f32.xlu1 %v759_v22 }
  0xd3   : > { %757 = vadd.xlane.f32.xlu0 %v756_v2 }
  0xd6   : > { %718 = vadd.xlane.f32.xlu1 %v717_v26 }
  0xd7   : > { %715 = vadd.xlane.f32.xlu0 %v714_v27 }
  0xda   : > { %766 = vadd.xlane.f32.xlu1 %v765_v32 }
  0xdb   : > { %763 = vadd.xlane.f32.xlu0 %v762_v33 }
  0xde   : > { %724 = vadd.xlane.f32.xlu1 %v723_v39 }
  0xdf   : > { %721 = vadd.xlane.f32.xlu0 %v720_v1 }
  0xe2   : > { %772 = vadd.xlane.f32.xlu1 %v771_v44 }
  0xe3   : > { %769 = vadd.xlane.f32.xlu0 %v768_v45 }
  0xe6   : > { %730 = vadd.xlane.f32.xlu1 %v729_v52 }
  0xe7   : > { %727 = vadd.xlane.f32.xlu0 %v726_v55 }
  0xea   : > { %778 = vadd.xlane.f32.xlu1 %v777_v60 }
  0xeb   : > { %775 = vadd.xlane.f32.xlu0 %v774_v61 }
  0xee   : > { %736 = vadd.xlane.f32.xlu1 %v735_v7 }
  0xef   : > { %733 = vadd.xlane.f32.xlu0 %v732_v8 }
  0xf2   : > { %784 = vadd.xlane.f32.xlu1 %v783_v11 }
  0xf3   : > { %781 = vadd.xlane.f32.xlu0 %v780_v47 }
 0x103   : > { %v530_v54 = vpop.xlane.xlu1 %529  ;;  %439 = vperm.xlu1 %1532, %v430_v13  }
 0x104   : > { %v524_v14 = vpop.xlane.xlu0 %523  ;;  %v848_v18 = vrot.slane %v530_v54, %v2222_v15 }
 0x105   : > { %v837_v0 = vrot.slane %v524_v14, %v2222_v15 }
 0x107   : > { %v533_v19 = vpop.xlane.xlu1 %532 }
 0x108   : > { %v527_v63 = vpop.xlane.xlu0 %526  ;;  %v852_v20 = vrot.slane %v533_v19, %v2225_v16 }
 0x109   : > { %v842_v21 = vrot.slane %v527_v63, %v2225_v16  ;;  %434 = vperm.xlu0 %1531, %v429_v17  }
 0x10a   : > { %v853_v22 = vsel %vm843_vm2, %v852_v20, %v848_v18 }
 0x10b   : > { %v844_v2 = vsel %vm843_vm2, %v842_v21, %v837_v0  ;;  %v575_v23 = vpop.xlane.xlu1 %574 }
 0x10c   : > { %v981_v3 = vsel %vm980_vm3, %v853_v22, %v844_v2  ;;  %v572_v24 = vpop.xlane.xlu0 %571  ;;  %v915_v25 = vrot.slane %v575_v23, %v2225_v16 }
 0x10d   : > { %v911_v26 = vrot.slane %v572_v24, %v2222_v15 }
 0x10f   : > { %v916_v27 = vsel %vm843_vm2, %v915_v25, %v911_v26  ;;  %v581_v28 = vpop.xlane.xlu1 %580 }
 0x110   : > { %v578_v29 = vpop.xlane.xlu0 %577  ;;  %v924_v30 = vrot.slane %v581_v28, %v2225_v16 }
 0x111   : > { %v920_v31 = vrot.slane %v578_v29, %v2222_v15 }
 0x113   : > { %v925_v32 = vsel %vm843_vm2, %v924_v30, %v920_v31  ;;  %v539_v35 = vpop.xlane.xlu1 %538 }
 0x114   : > { %v994_v33 = vsel %vm980_vm3, %v925_v32, %v916_v27  ;;  %v536_v36 = vpop.xlane.xlu0 %535  ;;  %v861_v37 = vrot.slane %v539_v35, %v2225_v16 }
 0x115   : > { %v857_v38 = vrot.slane %v536_v36, %v2222_v15 }
 0x117   : > { %v862_v39 = vsel %vm843_vm2, %v861_v37, %v857_v38  ;;  %v587_v40 = vpop.xlane.xlu1 %586 }
 0x118   : > { %v983_v1 = vsel %vm982_vm4, %v862_v39, %v981_v3  ;;  %v584_v41 = vpop.xlane.xlu0 %583  ;;  %v933_v42 = vrot.slane %v587_v40, %v2225_v16 }
 0x119   : > { %v929_v43 = vrot.slane %v584_v41, %v2222_v15 }
 0x11b   : > { %v934_v44 = vsel %vm843_vm2, %v933_v42, %v929_v43  ;;  %v545_v46 = vpop.xlane.xlu1 %544 }
 0x11c   : > { %v995_v45 = vsel %vm982_vm4, %v934_v44, %v994_v33  ;;  %v542_v49 = vpop.xlane.xlu0 %541  ;;  %v870_v50 = vrot.slane %v545_v46, %v2225_v16 }
 0x11d   : > { %v866_v51 = vrot.slane %v542_v49, %v2222_v15 }
 0x11f   : > { %v871_v52 = vsel %vm843_vm2, %v870_v50, %v866_v51  ;;  %v593_v56 = vpop.xlane.xlu1 %592 }
 0x120   : > { %v985_v55 = vsel %vm984_vm5, %v871_v52, %v983_v1  ;;  %v590_v57 = vpop.xlane.xlu0 %589  ;;  %v942_v58 = vrot.slane %v593_v56, %v2225_v16 }
 0x121   : > { %v938_v59 = vrot.slane %v590_v57, %v2222_v15 }
 0x123   : > { %v943_v60 = vsel %vm843_vm2, %v942_v58, %v938_v59  ;;  %v551_v62 = vpop.xlane.xlu1 %550 }
 0x124   : > { %v996_v61 = vsel %vm984_vm5, %v943_v60, %v995_v45  ;;  %v548_v4 = vpop.xlane.xlu0 %547  ;;  %v879_v5 = vrot.slane %v551_v62, %v2225_v16 }
 0x125   : > { %v875_v6 = vrot.slane %v548_v4, %v2222_v15 }
 0x127   : > { %v880_v7 = vsel %vm843_vm2, %v879_v5, %v875_v6  ;;  %v599_v9 = vpop.xlane.xlu1 %598 }
 0x128   : > { %v987_v8 = vsel %vm986_vm6, %v880_v7, %v985_v55  ;;  %v596_v10 = vpop.xlane.xlu0 %595  ;;  %v951_v11 = vrot.slane %v599_v9, %v2225_v16 }
 0x129   : > { %v947_v47 = vrot.slane %v596_v10, %v2222_v15 }
 0x12b   : > { %v952_v48 = vsel %vm843_vm2, %v951_v11, %v947_v47  ;;  %v557_v53 = vpop.xlane.xlu1 %556 }
 0x12c   : > { %v997_v13 = vsel %vm986_vm6, %v952_v48, %v996_v61  ;;  %v554_v54 = vpop.xlane.xlu0 %553  ;;  %v888_v14 = vrot.slane %v557_v53, %v2225_v16 }
 0x12d   : > { %v884_v17 = vrot.slane %v554_v54, %v2222_v15 }
 0x12f   : > { %v889_v18 = vsel %vm843_vm2, %v888_v14, %v884_v17  ;;  %v605_v63 = vpop.xlane.xlu1 %604 }
 0x130   : > { %v989_v19 = vsel %vm988_vm7, %v889_v18, %v987_v8  ;;  %v602_v0 = vpop.xlane.xlu0 %601  ;;  %v960_v20 = vrot.slane %v605_v63, %v2225_v16  ;;  %v788_v18 = vadd.s32 8, %v2217_v34 }
 0x131   : > { %v956_v21 = vrot.slane %v602_v0, %v2222_v15 }
 0x132   : > { %vm795_vm9 = vcmp.eq.s32.totalorder %v788_v18, %v2215_v12 }
 0x133   : > { %v961_v22 = vsel %vm843_vm2, %v960_v20, %v956_v21  ;;  %v695_v3 = vpop.xlane.xlu1 %694 }
 0x134   : > { %v2273_v2 = vsel %vm988_vm7, %v961_v22, %v997_v13  ;;  %v692_v23 = vpop.xlane.xlu0 %691  ;;  %v1046_v24 = vrot.slane %v695_v3, %v2225_v16  ;;  %v798_v3 = vstv %s2317_s5  ;;  %s1628_s5 = sshll.u32 %s1722_s8, 4  ;;  %s1629_s5 = int_to_ptr.vmem [resolvable:$false] %s1628_s5 }
 0x135   : > { %v1042_v25 = vrot.slane %v692_v23, %v2222_v15  ;;  %v799_v23 = vstv %s2319_s20  ;;  %s1630_s20 = scalar_lea.vmem %s1629_s5, 512  ;;  %p1631_p5 = scmp.lt.s32.totalorder %s2439_s21, %s1629_s5 }
 0x136   : > { %p1632_p11 = scmp.lt.s32.totalorder %s1630_s20, %s1624_s17 }
 0x137   : > { %v1047_v26 = vsel %vm843_vm2, %v1046_v24, %v1042_v25  ;;  %v701_v27 = vpop.xlane.xlu1 %700 }
 0x138   : > { %v698_v28 = vpop.xlane.xlu0 %697  ;;  %v1055_v29 = vrot.slane %v701_v27, %v2225_v16  ;;  %p1633_p3 = por %p1632_p11, %p1631_p5 }
 0x139   : > { %v1051_v30 = vrot.slane %v698_v28, %v2222_v15 }
 0x13a   : > { %p1634_p7 = pnand %p1633_p3, %p1627_p10 }
 0x13b   : > { %v1056_v31 = vsel %vm843_vm2, %v1055_v29, %v1051_v30  ;;  %v743_v33 = vpop.xlane.xlu1 %742 }
 0x13c   : > { %v2282_v32 = vsel %vm980_vm3, %v1056_v31, %v1047_v26  ;;  %v740_v35 = vpop.xlane.xlu0 %739  ;;  %v1118_v36 = vrot.slane %v743_v33, %v2225_v16 }
 0x13d   : > { %v1114_v37 = vrot.slane %v740_v35, %v2222_v15 }
 0x13f   : > { %v1119_v38 = vsel %vm843_vm2, %v1118_v36, %v1114_v37  ;;  %v749_v39 = vpop.xlane.xlu1 %748  ;;  %v801_v37 = vsel %vm795_vm9, %v798_v3, %v799_v23 }
 0x140   : > { %v746_v1 = vpop.xlane.xlu0 %745  ;;  %v1127_v40 = vrot.slane %v749_v39, %v2225_v16 }
 0x141   : > { %v1123_v41 = vrot.slane %v746_v1, %v2222_v15 }
 0x143   : > { %v1128_v42 = vsel %vm843_vm2, %v1127_v40, %v1123_v41  ;;  %v563_v44 = vpop.xlane.xlu1 %562 }
 0x144   : > { %v2291_v43 = vsel %vm980_vm3, %v1128_v42, %v1119_v38  ;;  %v560_v45 = vpop.xlane.xlu0 %559  ;;  %v897_v46 = vrot.slane %v563_v44, %v2225_v16  ;;  %v1202_v38 = vstv %s2326_s11 }
 0x145   : > { %v893_v49 = vrot.slane %v560_v45, %v2222_v15 }
 0x147   : > { %v898_v50 = vsel %vm843_vm2, %v897_v46, %v893_v49  ;;  %v611_v51 = vpop.xlane.xlu1 %610 }
 0x148   : > { %v608_v52 = vpop.xlane.xlu0 %607  ;;  %v2297_v55 = vsel %vm990_vm8, %v898_v50, %v989_v19  ;;  %v969_v19 = vrot.slane %v611_v51, %v2225_v16 }
 0x149   : > { %v965_v63 = vrot.slane %v608_v52, %v2222_v15 }
 0x14b   : > { %v707_v56 = vpop.xlane.xlu1 %706  ;;  %v970_v24 = vsel %vm843_vm2, %v969_v19, %v965_v63 }
 0x14c   : > { %v704_v57 = vpop.xlane.xlu0 %703  ;;  %v1064_v29 = vrot.slane %v707_v56, %v2225_v16  ;;  %v999_v49 = vsel %vm990_vm8, %v970_v24, %v2273_v2  ;;  %v1431_v2 = vld [vmem:[%s414_s23] ss:$0 sm:$0xff] }
 0x14d   : > { %v1060_v30 = vrot.slane %v704_v57, %v2222_v15 }
 0x14f   : > { %v755_v58 = vpop.xlane.xlu1 %754  ;;  %v1065_v50 = vsel %vm843_vm2, %v1064_v29, %v1060_v30 }
 0x150   : > { %v752_v59 = vpop.xlane.xlu0 %751  ;;  %v1136_v21 = vrot.slane %v755_v58, %v2225_v16 }
 0x151   : > { %v1132_v22 = vrot.slane %v752_v59, %v2222_v15 }
 0x153   : > { %v2299_v60 = vpop.xlane.xlu1 %568  ;;  %v1137_v39 = vsel %vm843_vm2, %v1136_v21, %v1132_v22  ;;  %v1184_v21 = vsel %vm982_vm4, %v1065_v50, %v2282_v32 }
 0x154   : > { %v566_v61 = vpop.xlane.xlu0 %565  ;;  %v906_v35 = vrot.slane %v2299_v60, %v2225_v16  ;;  %v1191_v57 = vsel %vm982_vm4, %v1137_v39, %v2291_v43 }
 0x155   : > { %v902_v36 = vrot.slane %v566_v61, %v2222_v15 }
 0x157   : > { %v617_v62 = vpop.xlane.xlu1 %616  ;;  %v907_v58 = vsel %vm843_vm2, %v906_v35, %v902_v36 }
 0x158   : > { %v614_v4 = vpop.xlane.xlu0 %613  ;;  %v978_v25 = vrot.slane %v617_v62, %v2225_v16  ;;  %v993_v12 = vsel %vm992_vm10, %v907_v58, %v2297_v55  ;;  %v1226_v58 = vstv %s1438_s26 }
 0x159   : > { %v974_v26 = vrot.slane %v614_v4, %v2222_v15 }
 0x15b   : > { %v2301_v5 = vpop.xlane.xlu1 %712  ;;  %v979_v41 = vsel %vm843_vm2, %v978_v25, %v974_v26 }
 0x15c   : > { %v2303_v6 = vpop.xlane.xlu0 %709  ;;  %v1073_v42 = vrot.slane %v2301_v5, %v2225_v16  ;;  %v1000_v5 = vsel %vm992_vm10, %v979_v41, %v999_v49 }
 0x15d   : > { %v1069_v44 = vrot.slane %v2303_v6, %v2222_v15 }
 0x15f   : > { %v761_v7 = vpop.xlane.xlu1 %760  ;;  %v1074_v6 = vsel %vm843_vm2, %v1073_v42, %v1069_v44 }
 0x160   : > { %v758_v8 = vpop.xlane.xlu0 %757  ;;  %v1145_v31 = vrot.slane %v761_v7, %v2225_v16 }
 0x161   : > { %v1141_v33 = vrot.slane %v758_v8, %v2222_v15 }
 0x163   : > { %v2305_v9 = vpop.xlane.xlu1 %718  ;;  %v1146_v51 = vsel %vm843_vm2, %v1145_v31, %v1141_v33  ;;  %v1206_v31 = vstv %s2389_s22 }
 0x164   : > { %v2307_v10 = vpop.xlane.xlu0 %715  ;;  %v1192_v7 = vsel %vm984_vm5, %v1146_v51, %v1191_v57  ;;  %v1082_v43 = vrot.slane %v2305_v9, %v2225_v16 }
 0x165   : > { %v1078_v8 = vrot.slane %v2307_v10, %v2222_v15 }
 0x167   : > { %v767_v11 = vpop.xlane.xlu1 %766  ;;  %v1083_v22 = vsel %vm843_vm2, %v1082_v43, %v1078_v8 }
 0x168   : > { %v764_v47 = vpop.xlane.xlu0 %763  ;;  %v1154_v1 = vrot.slane %v767_v11, %v2225_v16 }
 0x169   : > { %v1150_v40 = vrot.slane %v764_v47, %v2222_v15 }
 0x16b   : > { %v2309_v48 = vpop.xlane.xlu1 %724  ;;  %v1155_v61 = vsel %vm843_vm2, %v1154_v1, %v1150_v40 }
 0x16c   : > { %v2311_v13 = vpop.xlane.xlu0 %721  ;;  %v1091_v47 = vrot.slane %v2309_v48, %v2225_v16  ;;  %v1193_v19 = vsel %vm986_vm6, %v1155_v61, %v1192_v7 }
 0x16f   : > { %v2313_v53 = vpop.xlane.xlu1 %772 }
 0x170   : > { %v2315_v54 = vpop.xlane.xlu0 %769  ;;  %v1163_v52 = vrot.slane %v2313_v53, %v2225_v16  ;;  %v1087_v53 = vrot.slane %v2311_v13, %v2222_v15 }
 0x171   : > { %v1159_v56 = vrot.slane %v2315_v54, %v2222_v15 }
 0x173   : > { %v2321_v14 = vpop.xlane.xlu1 %730  ;;  %v1164_v54 = vsel %vm843_vm2, %v1163_v52, %v1159_v56  ;;  %v1222_v56 = vstv %s1437_s0 }
 0x174   : > { %v2323_v17 = vpop.xlane.xlu0 %727  ;;  %v1100_v9 = vrot.slane %v2321_v14, %v2225_v16  ;;  %v1194_v14 = vsel %vm988_vm7, %v1164_v54, %v1193_v19 }
 0x175   : > { %v1096_v10 = vrot.slane %v2323_v17, %v2222_v15  ;;  %v800_v17 = vsel %vm794_vm11, %v798_v3, %v799_v23 }
 0x177   : > { %v779_v0 = vpop.xlane.xlu1 %778  ;;  %v1101_v32 = vsel %vm843_vm2, %v1100_v9, %v1096_v10 }
 0x178   : > { %v776_v20 = vpop.xlane.xlu0 %775  ;;  %v1172_v59 = vrot.slane %v779_v0, %v2225_v16 }
 0x179   : > { %v1168_v60 = vrot.slane %v776_v20, %v2222_v15 }
 0x17b   : > { %v2338_v27 = vpop.xlane.xlu1 %736  ;;  %v1173_v63 = vsel %vm843_vm2, %v1172_v59, %v1168_v60 }
 0x17c   : > { %v2340_v28 = vpop.xlane.xlu0 %733  ;;  %v1109_v0 = vrot.slane %v2338_v27, %v2225_v16  ;;  %v1185_v27 = vsel %vm984_vm5, %v1074_v6, %v1184_v21 }
 0x17d   : > { %v1105_v48 = vrot.slane %v2340_v28, %v2222_v15  ;;  %v1186_v34 = vsel %vm986_vm6, %v1083_v22, %v1185_v27 }
 0x17f   : > { %v785_v45 = vpop.xlane.xlu1 %784  ;;  %v1110_v3 = vsel %vm843_vm2, %v1109_v0, %v1105_v48 }
 0x180   : > { %v782_v46 = vpop.xlane.xlu0 %781  ;;  %v1181_v62 = vrot.slane %v785_v45, %v2225_v16  ;;  %v1092_v16 = vsel %vm843_vm2, %v1091_v47, %v1087_v53 }
 0x181   : > { %v1177_v4 = vrot.slane %v782_v46, %v2222_v15  ;;  %v1195_v15 = vsel %vm990_vm8, %v1173_v63, %v1194_v14  ;;  %v1187_v30 = vsel %vm988_vm7, %v1092_v16, %v1186_v34 }
 0x182   : > { %v1188_v33 = vsel %vm990_vm8, %v1101_v32, %v1187_v30 }
 0x183   : > { %v440_v11 = vpop.permute.xlu1 %439  ;;  %v1182_v13 = vsel %vm843_vm2, %v1181_v62, %v1177_v4 }
 0x184   : > { %v449_v18 = vmul.f32 %v1431_v2, %v440_v11  ;;  %v1196_v28 = vsel %vm992_vm10, %v1182_v13, %v1195_v15 }
 0x186   : > { %v1004_v20 = vmul.f32 %v1000_v5, %v449_v18 }
 0x188   : > { %v435_v24 = vpop.permute.xlu0 %434  ;;  %v1006_v25 = vmul.f32 %v1004_v20, %v801_v37  ;;  %v1189_v37 = vsel %vm992_vm10, %v1110_v3, %v1188_v33 }
 0x189   : > { %v448_v26 = vmul.f32 %v1431_v2, %v435_v24 }
 0x18a   : > { %v1200_v23 = vmul.f32 %v1196_v28, %v1006_v25 }
 0x18b   : > { %v1003_v29 = vmul.f32 %v993_v12, %v448_v26 }
 0x18c   : > { %v1204_v35 = vmul.f32 %v1202_v38, %v1200_v23 }
 0x18d   : > { %v1005_v36 = vmul.f32 %v1003_v29, %v800_v17 }
 0x18e   : > { %v1208_v39 = vadd.f32 %v1206_v31, %v1204_v35 }
 0x18f   : > { %v1199_v1 = vmul.f32 %v1189_v37, %v1005_v36 }
 0x190   : > { %v1210_v40 = vsub.f32 0.0, %v1208_v39 }
 0x191   : > { %v1203_v55 = vmul.f32 %v1202_v38, %v1199_v1 }
 0x192   : > { %v1213_v41 = vmul.f32 1.442695, %v1210_v40 }
 0x193   : > { %v1207_v42 = vadd.f32 %v1206_v31, %v1203_v55 }
 0x194   : > { %1533 = vpow2.f32 %v1213_v41 }
 0x195   : > { %v1209_v44 = vsub.f32 0.0, %v1207_v42 }
 0x197   : > { %v1211_v45 = vmul.f32 1.442695, %v1209_v44 }
 0x199   : > { %1535 = vpow2.f32 %v1211_v45 }
 0x19e   : > { %v1534_v46 = vpop.eup %1533 }
 0x19f   : > { %v1216_v49 = vadd.f32 1.0, %v1534_v46 }
 0x1a1   : > { %1537 = vrcp.f32 %v1216_v49 }
 0x1a3   : > { %v1536_v50 = vpop.eup %1535 }
 0x1a4   : > { %v1215_v51 = vadd.f32 1.0, %v1536_v50 }
 0x1a6   : > { %1539 = vrcp.f32 %v1215_v51 }
 0x1ab   : > { %v1538_v52 = vpop.eup %1537 }
 0x1ac   : > { %v1220_v57 = vmul.f32 %v1538_v52, %v1208_v39 }
 0x1ae   : > { %v1224_v59 = vmul.f32 %v1222_v56, %v1220_v57 }
 0x1b0   : > { %v1540_v38 = vpop.eup %1539  ;;  %v1228_v60 = vadd.f32 %v1226_v58, %v1224_v59 }
 0x1b1   : > { %v1219_v2 = vmul.f32 %v1540_v38, %v1207_v42 }
 0x1b2   : > { %v1230_v61 = vsub.f32 0.0, %v1228_v60 }
 0x1b3   : > { %v1223_v62 = vmul.f32 %v1222_v56, %v1219_v2 }
 0x1b4   : > { %v1233_v4 = vmul.f32 1.442695, %v1230_v61 }
 0x1b5   : > { %v1227_v5 = vadd.f32 %v1226_v58, %v1223_v62 }
 0x1b6   : > { %1541 = vpow2.f32 %v1233_v4 }
 0x1b7   : > { %v1229_v6 = vsub.f32 0.0, %v1227_v5 }
 0x1b9   : > { %v1231_v7 = vmul.f32 1.442695, %v1229_v6 }
 0x1bb   : > { %1543 = vpow2.f32 %v1231_v7 }
 0x1c0   : > { %v1542_v43 = vpop.eup %1541 }
 0x1c1   : > { %v1236_v8 = vadd.f32 1.0, %v1542_v43 }
 0x1c3   : > { %1545 = vrcp.f32 %v1236_v8 }
 0x1c5   : > { %v1544_v11 = vpop.eup %1543 }
 0x1c6   : > { %v1235_v47 = vadd.f32 1.0, %v1544_v11 }
 0x1c8   : > { %1547 = vrcp.f32 %v1235_v47 }
 0x1cd   : > { %v1546_v53 = vpop.eup %1545 }
 0x1ce   : > { %v1240_v54 = vmul.f32 %v1546_v53, %v1228_v60 }
 0x1d0   : > { %v1242_v18 = vadd.f32 %v1240_v54, %v1200_v23 }
 0x1d2   : > { %v1548_v19 = vpop.eup %1547  ;;  %1244 = vst.msk [vmem:[%s411_s12 + $0x8] sm:$0xff] %vm689_vm1, %v1242_v18 }
 0x1d3   : > { %v1239_v9 = vmul.f32 %v1548_v19, %v1227_v5 }
 0x1d5   : > { %v1241_v10 = vadd.f32 %v1239_v9, %v1199_v1 }
 0x1d7   : > { %1243 = vst.msk [vmem:[%s411_s12] sm:$0xff] %vm689_vm1, %v1241_v10 }
 0x1d8   : > { %1637 = shalt.err (!%p1634_p7)
}
 0x1d9   : > { %s1638_s11 = scalar_lea.hbm %s2437_s15, 256  ;;  %s1642_s23 = scalar_lea.hbm %s2496_s7, 512 }
 0x1da   : > { %p1639_p0 = scmp.ne.s32.totalorder %s2437_s15, %s1638_s11  ;;  %p1643_p13 = scmp.lt.u32.totalorder %s2437_s15, %s2496_s7 }
 0x1db   : > { %p1644_p2 = scmp.lt.u32.totalorder %s1642_s23, %s1638_s11  ;;  %p1646_p6 = scmp.lt.u32.totalorder %s1638_s11, %s2437_s15 }
 0x1dc   : > { %p1640_p1 = pnand %p1639_p0, %p2529_p9 }
 0x1dd   : > { %p1645_p12 = por %p1644_p2, %p1643_p13 }
 0x1de   : > { %p1641_p8 = pneg %p1640_p1 }
 0x1df   : > { %p1647_p4 = por %p1646_p6, %p1645_p12 }
 0x1e1   : > { %p1648_p10 = pnand %p1647_p4, %p1641_p8 }
 0x1e3   : > { %1651 = shalt.err (!%p1648_p10)
}
 0x1e4   : > { %s1723_s26 = smov 128   ;;  %s1724_s10 = smov 8  }
 0x1e5   : > { %1456 = dma.vmem_to_hbm [thread:$0]  (%p2529_p9), %s2439_s21, 256, %s2437_s15, %s1246_s27, %s1723_s26, %s1723_s26, %s1724_s10  }
 0x1e6 PF: > { %s2530_s18 = sld [smem:[#allocation15_spill]]  ;;  %s1276_s12 = sand.u32 1, %s1694_s24  }
 0x1e7   : > { %p2531_p5 = scmp.ne.s32.totalorder %s2515_s14, 0  ;;  %s1277_s16 = scalar_lea.sflag [#allocation4], %s1276_s12 }
 0x1ec   : > { %p2532_p11 = scmp.ge.s32.totalorder %s2530_s18, 2 }
 0x1ee   : > { %p1470_p3 = pnand %p2532_p11, %p2531_p5 }
 0x1f0   : > { %1689 = dma.done.wait (!%p1470_p3), %s1277_s16, 256  }
 0x1f1   : > { %1691 = vsyncadd (!%p1470_p3), %s1277_s16, 4294967040  ;;  %s27_s29 = sadd.s32 1, %s2530_s18   ;;  %s2533_s30 = sld [smem:[#allocation14_spill]] }
 0x1f2   : > { %p24_p7 = scmp.ge.s32.totalorder %s27_s29, 4   ;;  %s2534_s26 = sld [smem:[#allocation17_spill]] }
 0x1f3   : > { %s2535_s13 = sld [smem:[#allocation16_spill]]  ;;  %s2536_s24 = smov %s1698_s25 }
 0x1f4   : > { %s2538_s27 = smov %s1710_s28  ;;  %26 = sbr.rel (!%p24_p7) target bundleno = 12 (0xc), region = 117 }
 0x1f7   : > { %s2537_s25 = smov %s2533_s30 }
 0x1f9   : > { %s2539_s28 = smov %s2535_s13 }
 0x1fb   :  { %1282 = vsyncpa [#allocation3], 1 }
 0x1fc   :  { %1284 = vsyncpa [#allocation3 + $0x1], 1 }
 0x1fd   :  { %1285 = vsyncpa [#allocation8], 1 }
 0x1fe   :  { %1287 = vsyncpa [#allocation8 + $0x1], 1 }
 0x1ff   :  { %1288 = vsyncpa [#allocation4], 1 }
 0x200   :  { %1290 = vsyncpa [#allocation4 + $0x1], 1 }
 0x201   :  { %1291 = vsyncpa [#allocation5], 1 }
 0x202   :  { %1293 = vsyncpa [#allocation5 + $0x1], 1 }

</bundles_post_ra>
